<compile_context>
chip_gen: v6e
topology: v6e:2x2x1
jax: 0.10.0
libtpu: 0.0.40
codegen_flags: <defaults>
</compile_context>

<pallas_src>
import functools

import jax
import jax.numpy as jnp
from jax.experimental import pallas as pl
from jax.experimental.pallas import tpu as pltpu


def _cdiv(a, b):
    return -(-a // b)


def _smoothed_ce(logits, lbl, *, lb_smooth, lb_ignore, num_classes,
                 n_pixels, tile_p, mask_tail):
    """Core math for one tile.

    logits: (1, C, TP) float32  (classes on sublanes, pixels on lanes)
    lbl   : (1, 1, TP) int32
    returns (loss (1,1,TP) float32 with invalid pixels zeroed, valid (1,1,TP) bool)
    """
    ignore = lbl == lb_ignore                                   # (1, 1, TP)
    lbl_c = jnp.where(ignore, 0, lbl)

    # log_softmax over the class (sublane) axis.
    m = jnp.max(logits, axis=1, keepdims=True)                  # (1, 1, TP)
    z = logits - m
    lse = jnp.log(jnp.sum(jnp.exp(z), axis=1, keepdims=True))   # (1, 1, TP)
    logs = z - lse                                              # (1, C, TP)

    # Smoothed one-hot target: lb_neg everywhere, lb_pos at the true class.
    lb_pos = 1.0 - lb_smooth
    lb_neg = lb_smooth / num_classes
    cls = jax.lax.broadcasted_iota(jnp.int32, logits.shape, 1)  # class ids on sublanes
    smooth = jnp.where(cls == lbl_c, lb_pos, lb_neg)            # (1, C, TP)

    loss = -jnp.sum(logs * smooth, axis=1, keepdims=True)       # (1, 1, TP)

    valid = jnp.logical_not(ignore)
    if mask_tail:
        # Last pixel tile may run past P; mask those lanes (logits there are garbage).
        pix = (jax.lax.broadcasted_iota(jnp.int32, ignore.shape, 2)
               + pl.program_id(1) * tile_p)
        valid = jnp.logical_and(valid, pix < n_pixels)
    loss = jnp.where(valid, loss, 0.0)
    return loss, valid


def _reduce_kernel(logits_ref, label_ref, psum_ref, pcnt_ref, *,
                   lb_smooth, lb_ignore, num_classes, n_pixels, tile_p, mask_tail):
    """Emit per-tile partial (loss-sum, valid-count) as lane-dense (1,1,1,128) blocks."""
    loss, valid = _smoothed_ce(
        logits_ref[...].astype(jnp.float32), label_ref[...],
        lb_smooth=lb_smooth, lb_ignore=lb_ignore, num_classes=num_classes,
        n_pixels=n_pixels, tile_p=tile_p, mask_tail=mask_tail)
    psum_ref[...] = jnp.broadcast_to(jnp.sum(loss), psum_ref.shape)
    pcnt_ref[...] = jnp.broadcast_to(jnp.sum(valid.astype(jnp.float32)),
                                     pcnt_ref.shape)


def _per_pixel_kernel(logits_ref, label_ref, loss_ref, *,
                      lb_smooth, lb_ignore, num_classes, n_pixels, tile_p, mask_tail):
    """reduction='none': per-pixel loss, lane-dense (1,1,TP) output."""
    loss, _ = _smoothed_ce(
        logits_ref[...].astype(jnp.float32), label_ref[...],
        lb_smooth=lb_smooth, lb_ignore=lb_ignore, num_classes=num_classes,
        n_pixels=n_pixels, tile_p=tile_p, mask_tail=mask_tail)
    loss_ref[...] = loss.astype(loss_ref.dtype)


def label_smooth_softmax_ce(logits, label, *, lb_smooth=0.1, reduction="mean",
                            lb_ignore=-100, tile_pixels=None):
    """JAX/Pallas equivalent of LabelSmoothSoftmaxCEV1.forward.

    logits: (N, C, H, W) float (float32 or bfloat16 — upcast to f32 in-kernel)
    label : (N, H, W) int (lb_ignore marks ignored pixels)
    """
    N, C, H, W = logits.shape
    P = H * W

    # Pure views — no transpose / pad (avoids a full extra HBM pass over logits).
    logits3 = logits.reshape(N, C, P)
    label3 = label.reshape(N, 1, P).astype(jnp.int32)

    # Pick the pixel tile (lane axis).  Target ~4 MiB logits block (double-buffered
    # ≈ 8–10 MiB working set) — comfortably inside v7x's 64 MiB VMEM and well past
    # the ~85%-of-roofline tile-size knee on v5e/v6e.
    if tile_pixels is None:
        target_bytes = 4 << 20
        tp = max(128, ((target_bytes // (C * 4)) // 128) * 128)
    else:
        tp = max(128, (int(tile_pixels) // 128) * 128)
    if tp >= P:
        tp = P                      # single tile: block last dim == full array dim
    grid_p = _cdiv(P, tp)
    mask_tail = (P % tp) != 0

    cfg = dict(lb_smooth=float(lb_smooth), lb_ignore=int(lb_ignore),
               num_classes=C, n_pixels=P, tile_p=tp, mask_tail=mask_tail)

    # Explicit VMEM budget: lifts v5e's 16 MiB scoped default, stays within v7x's
    # 64 MiB physical VMEM (default tile keeps the working set ≈ 8–12 MiB).
    elem = jnp.dtype(logits.dtype).itemsize
    work = 2 * (tp * C * elem + 2 * tp * 4) + (2 << 20)
    cparams = pltpu.CompilerParams(
        dimension_semantics=("parallel", "parallel"),   # no resident accumulators
        vmem_limit_bytes=int(min(max(work, 32 << 20), 64 << 20)),
    )

    in_specs = [
        pl.BlockSpec((1, C, tp), lambda n, p: (n, 0, p)),   # logits tile
        pl.BlockSpec((1, 1, tp), lambda n, p: (n, 0, p)),   # labels, lane-dense
    ]

    if reduction in ("mean", "sum"):
        # Only per-tile partial sums/counts leave the kernel — no per-pixel store.
        psum, pcnt = pl.pallas_call(
            functools.partial(_reduce_kernel, **cfg),
            out_shape=(
                jax.ShapeDtypeStruct((N, grid_p, 1, 128), jnp.float32),
                jax.ShapeDtypeStruct((N, grid_p, 1, 128), jnp.float32),
            ),
            grid_spec=pltpu.PrefetchScalarGridSpec(
                num_scalar_prefetch=0,
                grid=(N, grid_p),
                in_specs=in_specs,
                out_specs=[
                    pl.BlockSpec((1, 1, 1, 128), lambda n, p: (n, p, 0, 0)),
                    pl.BlockSpec((1, 1, 1, 128), lambda n, p: (n, p, 0, 0)),
                ],
            ),
            compiler_params=cparams,
        )(logits3, label3)
        loss_sum = jnp.sum(psum[:, :, 0, 0])
        if reduction == "sum":
            return loss_sum
        n_valid = jnp.sum(pcnt[:, :, 0, 0])
        # NOTE: if every pixel is ignored this divides by zero — same as PyTorch.
        return loss_sum / n_valid

    # reduction == 'none': per-pixel loss with ignored pixels zeroed.
    loss3 = pl.pallas_call(
        functools.partial(_per_pixel_kernel, **cfg),
        out_shape=jax.ShapeDtypeStruct((N, 1, P), jnp.float32),
        grid_spec=pltpu.PrefetchScalarGridSpec(
            num_scalar_prefetch=0,
            grid=(N, grid_p),
            in_specs=in_specs,
            out_specs=pl.BlockSpec((1, 1, tp), lambda n, p: (n, 0, p)),
        ),
        compiler_params=cparams,
    )(logits3, label3)
    return loss3.reshape(N, H, W)


def _reference(logits, label, lb_smooth=0.1, lb_ignore=-100, reduction="mean"):
    """Pure-JAX reference mirroring the PyTorch forward."""
    N, C, H, W = logits.shape
    ignore = label == lb_ignore
    n_valid = jnp.sum(~ignore)
    lbl = jnp.where(ignore, 0, label)
    lb_pos, lb_neg = 1.0 - lb_smooth, lb_smooth / C
    onehot = jax.nn.one_hot(lbl, C, axis=1, dtype=jnp.float32)   # (N, C, H, W)
    smooth = jnp.where(onehot > 0, lb_pos, lb_neg)
    logs = jax.nn.log_softmax(logits.astype(jnp.float32), axis=1)
    loss = -jnp.sum(logs * smooth, axis=1)
    loss = jnp.where(ignore, 0.0, loss)
    if reduction == "mean":
        return jnp.sum(loss) / n_valid
    if reduction == "sum":
        return jnp.sum(loss)
    return loss


if __name__ == "__main__":
    key = jax.random.PRNGKey(0)
    k1, k2, k3 = jax.random.split(key, 3)

    # Shapes implied by the module: NCHW logits, (N, H, W) labels.
    N, C, H, W = 2, 4, 16, 16
    logits = jax.random.normal(k1, (N, C, H, W), dtype=jnp.float32)
    label = jax.random.randint(k2, (N, H, W), 0, C, dtype=jnp.int32)
    ignore_mask = jax.random.uniform(k3, (N, H, W)) < 0.2   # ~20% ignored pixels
    label = jnp.where(ignore_mask, -100, label)

    # reduction='mean' (default training path).
    out = label_smooth_softmax_ce(logits, label, lb_smooth=0.1,
                                  reduction="mean", lb_ignore=-100)
    out = jax.block_until_ready(out)
    ref = _reference(logits, label, 0.1, -100, "mean")
    assert jnp.allclose(out, ref, atol=1e-5, rtol=1e-5), (out, ref)

    # reduction='none' (per-pixel) path.
    out_none = jax.block_until_ready(
        label_smooth_softmax_ce(logits, label, lb_smooth=0.1,
                                reduction="none", lb_ignore=-100))
    ref_none = _reference(logits, label, 0.1, -100, "none")
    assert out_none.shape == (N, H, W)
    assert jnp.allclose(out_none, ref_none, atol=1e-5, rtol=1e-5)

    # Multi-tile grid with a ragged pixel tail (P=320, forced 128-pixel tiles)
    # to exercise the in-kernel tail masking (no logits pad).
    N2, C2, H2, W2 = 1, 5, 16, 20
    l2 = jax.random.normal(k1, (N2, C2, H2, W2), dtype=jnp.float32)
    lb2 = jax.random.randint(k2, (N2, H2, W2), 0, C2, dtype=jnp.int32)
    lb2 = jnp.where(jax.random.uniform(k3, (N2, H2, W2)) < 0.2, -100, lb2)
    out2 = jax.block_until_ready(
        label_smooth_softmax_ce(l2, lb2, lb_smooth=0.1, reduction="mean",
                                lb_ignore=-100, tile_pixels=128))
    ref2 = _reference(l2, lb2, 0.1, -100, "mean")
    assert jnp.allclose(out2, ref2, atol=1e-5, rtol=1e-5), (out2, ref2)

    print("KERNEL_OK")
</pallas_src>

<mosaic_0001>
module attributes {stable_mosaic.version = 11 : i64} {
  func.func @_reduce_kernel(%arg0: i32, %arg1: i32, %arg2: memref<1x4x256xf32, #tpu.memory_space<vmem>>, %arg3: memref<1x1x256xi32, #tpu.memory_space<vmem>>, %arg4: memref<1x1x1x128xf32, #tpu.memory_space<vmem>>, %arg5: memref<1x1x1x128xf32, #tpu.memory_space<vmem>>) attributes {dimension_semantics = [#tpu.dimension_semantics<parallel>, #tpu.dimension_semantics<parallel>], iteration_bounds = array<i64: 2, 1>, scalar_prefetch = 0 : i64, scratch_operands = 0 : i64, tpu.core_type = #tpu.core_type<tc>, window_params = [{transform_indices = @transform_0, window_bounds = array<i64: 1, 4, 256>}, {transform_indices = @transform_1, window_bounds = array<i64: 1, 1, 256>}, {transform_indices = @transform_2, window_bounds = array<i64: 1, 1, 1, 128>}, {transform_indices = @transform_3, window_bounds = array<i64: 1, 1, 1, 128>}]} {
    %c0 = arith.constant 0 : index
    %c0_0 = arith.constant 0 : index
    %c0_1 = arith.constant 0 : index
    %0 = vector.load %arg2[%c0, %c0_0, %c0_1] : memref<1x4x256xf32, #tpu.memory_space<vmem>>, vector<1x4x256xf32>
    %c0_2 = arith.constant 0 : index
    %c0_3 = arith.constant 0 : index
    %c0_4 = arith.constant 0 : index
    %1 = vector.load %arg3[%c0_2, %c0_3, %c0_4] : memref<1x1x256xi32, #tpu.memory_space<vmem>>, vector<1x1x256xi32>
    %c-100_i32 = arith.constant -100 : i32
    %2 = vector.broadcast %c-100_i32 : i32 to vector<1x1x256xi32>
    %3 = arith.cmpi eq, %1, %2 : vector<1x1x256xi32>
    %c0_i32 = arith.constant 0 : i32
    %4 = vector.broadcast %c0_i32 : i32 to vector<1x1x256xi32>
    %5 = arith.select %3, %4, %1 : vector<1x1x256xi1>, vector<1x1x256xi32>
    %cst = arith.constant dense<0xFF800000> : vector<1x256xf32>
    %6 = vector.multi_reduction <maximumf>, %0, %cst [1] : vector<1x4x256xf32> to vector<1x256xf32>
    %7 = vector.shape_cast %6 : vector<1x256xf32> to vector<1x1x256xf32>
    %8 = vector.broadcast %7 : vector<1x1x256xf32> to vector<1x4x256xf32>
    %9 = arith.subf %0, %8 : vector<1x4x256xf32>
    %10 = math.exp %9 : vector<1x4x256xf32>
    %cst_5 = arith.constant dense<0.000000e+00> : vector<1x256xf32>
    %11 = vector.multi_reduction <add>, %10, %cst_5 [1] : vector<1x4x256xf32> to vector<1x256xf32>
    %12 = vector.shape_cast %11 : vector<1x256xf32> to vector<1x1x256xf32>
    %13 = math.log %12 : vector<1x1x256xf32>
    %14 = vector.broadcast %13 : vector<1x1x256xf32> to vector<1x4x256xf32>
    %15 = arith.subf %9, %14 : vector<1x4x256xf32>
    %16 = tpu.iota {dimensions = array<i32: 1>} : vector<1x4x256xi32>
    %17 = vector.broadcast %5 : vector<1x1x256xi32> to vector<1x4x256xi32>
    %18 = arith.cmpi eq, %16, %17 : vector<1x4x256xi32>
    %cst_6 = arith.constant 0.899999976 : f32
    %cst_7 = arith.constant 2.500000e-02 : f32
    %19 = vector.broadcast %cst_6 : f32 to vector<1x4x256xf32>
    %20 = vector.broadcast %cst_7 : f32 to vector<1x4x256xf32>
    %21 = arith.select %18, %19, %20 : vector<1x4x256xi1>, vector<1x4x256xf32>
    %22 = arith.mulf %15, %21 : vector<1x4x256xf32>
    %cst_8 = arith.constant dense<0.000000e+00> : vector<1x256xf32>
    %23 = vector.multi_reduction <add>, %22, %cst_8 [1] : vector<1x4x256xf32> to vector<1x256xf32>
    %24 = vector.shape_cast %23 : vector<1x256xf32> to vector<1x1x256xf32>
    %cst_9 = arith.constant 0.000000e+00 : f32
    %25 = vector.broadcast %cst_9 : f32 to vector<1x1x256xf32>
    %26 = arith.subf %25, %24 : vector<1x1x256xf32>
    %cst_10 = arith.constant dense<true> : vector<1x1x256xi1>
    %27 = arith.xori %3, %cst_10 : vector<1x1x256xi1>
    %cst_11 = arith.constant 0.000000e+00 : f32
    %28 = vector.broadcast %cst_11 : f32 to vector<1x1x256xf32>
    %29 = arith.select %27, %26, %28 : vector<1x1x256xi1>, vector<1x1x256xf32>
    %30 = vector.shape_cast %29 : vector<1x1x256xf32> to vector<1x1x1x256xf32>
    %cst_12 = arith.constant dense<0.000000e+00> : vector<1xf32>
    %31 = vector.multi_reduction <add>, %30, %cst_12 [1, 2, 3] : vector<1x1x1x256xf32> to vector<1xf32>
    %32 = vector.shape_cast %31 : vector<1xf32> to vector<1x1x1x1xf32>
    %33 = vector.extract %32[0, 0, 0, 0] : f32 from vector<1x1x1x1xf32>
    %34 = vector.broadcast %33 : f32 to vector<1x1x1x128xf32>
    %c0_13 = arith.constant 0 : index
    %c0_14 = arith.constant 0 : index
    %c0_15 = arith.constant 0 : index
    %c0_16 = arith.constant 0 : index
    %35 = vector.load %arg4[%c0_13, %c0_14, %c0_15, %c0_16] : memref<1x1x1x128xf32, #tpu.memory_space<vmem>>, vector<1x1x1x128xf32>
    tpu.vector_store %arg4[%c0_13, %c0_14, %c0_15, %c0_16], %34 {strides = array<i32>} : memref<1x1x1x128xf32, #tpu.memory_space<vmem>>, vector<1x1x1x128xf32>,
    %36 = arith.extui %27 : vector<1x1x256xi1> to vector<1x1x256xi32>
    %37 = arith.sitofp %36 : vector<1x1x256xi32> to vector<1x1x256xf32>
    %38 = vector.shape_cast %37 : vector<1x1x256xf32> to vector<1x1x1x256xf32>
    %cst_17 = arith.constant dense<0.000000e+00> : vector<1xf32>
    %39 = vector.multi_reduction <add>, %38, %cst_17 [1, 2, 3] : vector<1x1x1x256xf32> to vector<1xf32>
    %40 = vector.shape_cast %39 : vector<1xf32> to vector<1x1x1x1xf32>
    %41 = vector.extract %40[0, 0, 0, 0] : f32 from vector<1x1x1x1xf32>
    %42 = vector.broadcast %41 : f32 to vector<1x1x1x128xf32>
    %c0_18 = arith.constant 0 : index
    %c0_19 = arith.constant 0 : index
    %c0_20 = arith.constant 0 : index
    %c0_21 = arith.constant 0 : index
    %43 = vector.load %arg5[%c0_18, %c0_19, %c0_20, %c0_21] : memref<1x1x1x128xf32, #tpu.memory_space<vmem>>, vector<1x1x1x128xf32>
    tpu.vector_store %arg5[%c0_18, %c0_19, %c0_20, %c0_21], %42 {strides = array<i32>} : memref<1x1x1x128xf32, #tpu.memory_space<vmem>>, vector<1x1x1x128xf32>,
    return
  }
  func.func @transform_0(%arg0: i32, %arg1: i32) -> (i32, i32, i32) {
    %c0_i32 = arith.constant 0 : i32
    %c0_i32_0 = arith.constant 0 : i32
    return %arg0, %c0_i32, %arg1 : i32, i32, i32
  }
  func.func @transform_1(%arg0: i32, %arg1: i32) -> (i32, i32, i32) {
    %c0_i32 = arith.constant 0 : i32
    %c0_i32_0 = arith.constant 0 : i32
    return %arg0, %c0_i32, %arg1 : i32, i32, i32
  }
  func.func @transform_2(%arg0: i32, %arg1: i32) -> (i32, i32, i32, i32) {
    %c0_i32 = arith.constant 0 : i32
    %c0_i32_0 = arith.constant 0 : i32
    %c0_i32_1 = arith.constant 0 : i32
    return %arg0, %arg1, %c0_i32, %c0_i32_0 : i32, i32, i32, i32
  }
  func.func @transform_3(%arg0: i32, %arg1: i32) -> (i32, i32, i32, i32) {
    %c0_i32 = arith.constant 0 : i32
    %c0_i32_0 = arith.constant 0 : i32
    %c0_i32_1 = arith.constant 0 : i32
    return %arg0, %arg1, %c0_i32, %c0_i32_0 : i32, i32, i32, i32
  }
}

</mosaic_0001>

<bundles_post_ra>
// kernel: tpu_custom_call.1
= control target key start
LH: loop header
LB: loop body
LE: loop exit
PB: predicated region body
PF: predicated region fallthrough
CT: control target
= control target key end

     0   :  { %9 = vsyncpa [#allocation3], 0  ;;  %s1117_s0 = inlined_call_operand.hbm [shape: f32[2,4,256], index: 0, kind: input, shape index: {}]   ;;  %s1118_s1 = inlined_call_operand.hbm [shape: s32[2,1,256], index: 1, kind: input, shape index: {}]   ;;  %s1119_s2 = inlined_call_operand.hbm [shape: f32[2,1,1,128], index: 2, kind: output, shape index: {0}]   ;;  %s1120_s3 = inlined_call_operand.hbm [shape: f32[2,1,1,128], index: 3, kind: output, shape index: {1}]  }
   0x1   :  { %11 = vsyncpa [#allocation3 + $0x1], 0 }
   0x2   :  { %12 = vsyncpa [#allocation6], 0 }
   0x3   :  { %14 = vsyncpa [#allocation6 + $0x1], 0 }
   0x4   :  { %15 = vsyncpa [#allocation4], 0 }
   0x5   :  { %17 = vsyncpa [#allocation4 + $0x1], 0 }
   0x6   :  { %18 = vsyncpa [#allocation9], 0 }
   0x7   :  { %20 = vsyncpa [#allocation9 + $0x1], 0  ;;  %s898_s12 = smov 0   ;;  %s900_s13 = smov 0  }
   0x8   :  { %s902_s14 = smov 0   ;;  %s904_s15 = smov 0  }
   0x9   :  { %s906_s16 = smov 0   ;;  %s908_s17 = smov 0  }
   0xa LB: > { %s591_s18 = sadd.s32 4294967295, %s868_s17   ;;  %s592_s19 = sadd.s32 4294967294, %s868_s17   ;;  %s868_s17 = sphi %s908_s17, %s26_s17   ;;  %s864_s16 = sphi %s906_s16, %s1132_s16   ;;  %s860_s15 = sphi %s904_s15, %s1131_s15   ;;  %s856_s14 = sphi %s902_s14, %s1130_s14   ;;  %s852_s13 = sphi %s900_s13, %s1129_s13   ;;  %s848_s12 = sphi %s898_s12, %s1128_s12  }
   0xb   : > { %s38_s20 = sadd.s32 1, %s864_s16  ;;  %s47_s21 = sadd.s32 1, %s856_s14 }
   0xc   : > { %p40_p0 = scmp.ge.s32.totalorder %s38_s20, 2  ;;  %p54_p1 = scmp.ne.s32.totalorder %s856_s14, %s852_s13 }
   0xd   : > { %p55_p2 = scmp.eq.s32.totalorder %s868_s17, 0  ;;  %p60_p3 = scmp.ne.s32.totalorder %s852_s13, %s848_s12 }
   0xe   : > { %s1134_s20 = smov (%p40_p0, %s38_s20), 0  ;;  %p61_p5 = scmp.eq.s32.totalorder %s591_s18, 0 }
   0xf   : > { %p939_p4 = por %p55_p2, %p54_p1  ;;  %s42_s23 = ssub.s32 %s864_s16, %s1134_s20 }
  0x10   : > { %p114_p6 = scmp.eq.s32.totalorder %s591_s18, 1  ;;  %p45_p7 = scmp.eq.s32.totalorder %s42_s23, 0 }
  0x11   : > { %p945_p8 = por %p61_p5, %p60_p3  ;;  %p120_p10 = scmp.eq.s32.totalorder %s592_s19, 1 }
  0x12   : > { %p949_p9 = por %p114_p6, %p54_p1  ;;  %p637_p13 = scmp.lt.s32.totalorder %s868_s17, 2 }
  0x13   : > { %s954_s26 = scalar_select %p45_p7, %s856_s14, %s47_s21  }
  0x14   : > { %p956_p11 = por %p120_p10, %p60_p3  ;;  %s963_s28 = sand.u32 1, %s856_s14  }
  0x15   : > { %s595_s29 = sshll.u32 %s963_s28, 3  ;;  %s609_s30 = sshll.u32 %s864_s16, 7 }
  0x16   : > { %s180_s6 = scalar_lea.hbm %s1117_s0, %s609_s30  ;;  %s172_s7 = scalar_lea.vmem [#allocation2], %s595_s29 }
  0x17   : > { %s182_s8 = sshll.u32 %s172_s7, 4  ;;  %p972_p0 = pnand %p637_p13, %p939_p4  ;;  %s183_s8 = int_to_ptr.vmem [resolvable:$true] %s182_s8 }
  0x18   : > { %p601_p1 = scmp.ge.s32.totalorder %s868_s17, 1  ;;  %p208_p2 = scmp.lt.s32.totalorder %s868_s17, 3 }
  0x19   : > { %s169_s10 = scalar_lea.sflag [#allocation3], %s963_s28  ;;  %p700_p3 = pneg %p972_p0 }
  0x1a   : > { %s711_s11 = scalar_lea.vmem %s183_s8, 128  ;;  %s870_s18 = smov [#allocation2]  }
  0x1b   : > { %p712_p5 = scmp.ne.s32.totalorder %s183_s8, %s711_s11  ;;  %s716_s19 = sshll.u32 %s870_s18, 4  ;;  %s717_s19 = int_to_ptr.vmem [resolvable:$false] %s716_s19 }
  0x1c   : > { %s718_s21 = scalar_lea.vmem %s717_s19, 256  ;;  %p719_p4 = scmp.lt.s32.totalorder %s183_s8, %s717_s19 }
  0x1d   : > { %p714_p6 = pnand %p712_p5, %p700_p3  ;;  %p720_p10 = scmp.lt.s32.totalorder %s718_s21, %s711_s11 }
  0x1f   : > { %p715_p7 = pneg %p714_p6  ;;  %p721_p13 = por %p720_p10, %p719_p4 }
  0x21   : > { %p722_p12 = pnand %p721_p13, %p715_p7 }
  0x23   : > { %725 = shalt.err (!%p722_p12)
}
  0x24   : > { %626 = dma.hbm_to_vmem [thread:$0]  (!%p972_p0), %s180_s6, 128, %s183_s8, %s169_s10  }
  0x25   : > { %p990_p5 = pnand %p601_p1, %p208_p2  ;;  %s598_s23 = sshll.u32 %s963_s28, 1 }
  0x26   : > { %s610_s29 = sshll.u32 %s864_s16, 5  ;;  %s193_s7 = scalar_lea.vmem [#allocation5], %s598_s23 }
  0x27   : > { %s201_s5 = scalar_lea.hbm %s1118_s1, %s610_s29  ;;  %s203_s11 = sshll.u32 %s193_s7, 4  ;;  %s204_s11 = int_to_ptr.vmem [resolvable:$true] %s203_s11 }
  0x28   : > { %s190_s18 = scalar_lea.sflag [#allocation6], %s963_s28  ;;  %s739_s19 = scalar_lea.vmem %s204_s11, 32 }
  0x29   : > { %p740_p12 = scmp.ne.s32.totalorder %s204_s11, %s739_s19  ;;  %s871_s6 = smov [#allocation5]  }
  0x2a   : > { %s744_s8 = sshll.u32 %s871_s6, 4  ;;  %s745_s8 = int_to_ptr.vmem [resolvable:$false] %s744_s8 }
  0x2b   : > { %p742_p6 = pnand %p740_p12, %p700_p3  ;;  %s746_s10 = scalar_lea.vmem %s745_s8, 64 }
  0x2c   : > { %p747_p1 = scmp.lt.s32.totalorder %s204_s11, %s745_s8  ;;  %p748_p2 = scmp.lt.s32.totalorder %s746_s10, %s739_s19 }
  0x2d   : > { %p743_p7 = pneg %p742_p6 }
  0x2e   : > { %p749_p4 = por %p748_p2, %p747_p1 }
  0x30   : > { %p750_p10 = pnand %p749_p4, %p743_p7 }
  0x32   : > { %753 = shalt.err (!%p750_p10)
}
  0x33   : > { %629 = dma.hbm_to_vmem [thread:$0]  (!%p972_p0), %s201_s5, 32, %s204_s11, %s190_s18  }
  0x34   : > { %212 = sbr.rel (%p990_p5) target bundleno = 400 (0x190), region = 28  ;;  %s1008_s28 = sand.u32 (!%p990_p5), 1, %s852_s13  }
  0x35   : > { %s602_s21 = sshll.u32 (!%p990_p5), %s1008_s28, 3  ;;  %s215_s23 = scalar_lea.sflag (!%p990_p5), [#allocation3], %s1008_s28 }
  0x36   : > { %s218_s29 = scalar_lea.vmem (!%p990_p5), [#allocation2], %s602_s21 }
  0x39   : > { %831 = dma.done.wait (%p945_p8), %s215_s23, 128  }
  0x3a   : > { %833 = vsyncadd (%p945_p8), %s215_s23, 4294967168  ;;  %s603_s9 = sshll.u32 %s1008_s28, 1  ;;  %s224_s22 = scalar_lea.sflag [#allocation6], %s1008_s28 }
  0x3b   : > { %s1018_s30 = scalar_lea.vmem [#allocation5], %s603_s9 }
  0x3c   : > { %835 = dma.done.wait (%p945_p8), %s224_s22, 32  }
  0x3d   : > { %837 = vsyncadd (%p945_p8), %s224_s22, 4294967264  ;;  %vm267_vm0 = vcmask 1043456   ;;  %v260_v0 = vld [vmem:[%s218_s29] sm:$0xff]  ;;  %v315_v32 = vlaneseq  ;;  %v261_v35 = vld [vmem:[%s1018_s30] sm:$0x3]  ;;  %vm874_vm4 = vmmov 1  }
  0x3e   : > { %v265_v1 = vcombine.high %v260_v0, %v260_v0  ;;  %v268_v2 = vsel %vm267_vm0, %v260_v0, -inf  ;;  %vm262_vm1 = vcmp.eq.s32.totalorder %v261_v35, 4294967196  ;;  %v872_v46 = vmov 0.025   ;;  %s605_s24 = sshll.u32 %s860_s15, 4  ;;  %s251_s4 = scalar_lea.vmem [#allocation7], %s1008_s28 }
  0x3f   : > { %v269_v3 = vrot.slane %v268_v2, 4  ;;  %v316_v37 = vshrl.u32 %v315_v32, 7  ;;  %v263_v40 = vsel %vm262_vm1, 0, %v261_v35  ;;  %vm353_vm5 = vmxor %vm262_vm1, %vm874_vm4  ;;  %vm384_vm6 = vcmask 1040384   ;;  %s444_s5 = sshll.u32 %s251_s4, 4  ;;  %s257_s7 = scalar_lea.vmem [#allocation8], %s1008_s28  ;;  %s1045_s5 = int_to_ptr.vmem [resolvable:$true] %s444_s5 }
  0x40   : > { %v275_v4 = vsel %vm267_vm0, %v265_v1, -inf  ;;  %s458_s11 = sshll.u32 %s257_s7, 4  ;;  %s1043_s6 = scalar_lea.hbm %s1119_s2, %s605_s24  ;;  %s1047_s11 = int_to_ptr.vmem [resolvable:$true] %s458_s11 }
  0x41   : > { %v270_v5 = vmax.f32 %v268_v2, %v269_v3  ;;  %v276_v6 = vrot.slane %v275_v4, 4  ;;  %v319_v38 = vsub.s32 0, %v316_v37  ;;  %v323_v39 = vsub.s32 1, %v316_v37  ;;  %s427_s10 = scalar_lea.sflag [#allocation4], %s1008_s28  ;;  %s754_s21 = scalar_lea.vmem %s1045_s5, 16 }
  0x42   : > { %p755_p8 = scmp.ne.s32.totalorder %s1045_s5, %s754_s21  ;;  %s876_s23 = smov [#allocation7]  }
  0x43   : > { %v271_v7 = vrot.slane %v270_v5, 2  ;;  %v277_v8 = vmax.f32 %v275_v4, %v276_v6  ;;  %v320_v41 = vrot.slane %v263_v40, %v319_v38  ;;  %v324_v42 = vrot.slane %v263_v40, %v323_v39  ;;  %s758_s29 = sshll.u32 %s876_s23, 4  ;;  %s759_s29 = int_to_ptr.vmem [resolvable:$false] %s758_s29 }
  0x44   : > { %p756_p0 = pnand %p755_p8, %p949_p9  ;;  %s760_s9 = scalar_lea.vmem %s759_s29, 32 }
  0x45   : > { %v272_v9 = vmax.f32 %v270_v5, %v271_v7  ;;  %v278_v10 = vrot.slane %v277_v8, 2  ;;  %vm325_vm2 = vcmp.eq.s32.totalorder %v316_v37, %v320_v41  ;;  %vm326_vm3 = vcmp.eq.s32.totalorder %v316_v37, %v324_v42  ;;  %p761_p13 = scmp.lt.s32.totalorder %s1045_s5, %s759_s29  ;;  %p762_p5 = scmp.lt.s32.totalorder %s760_s9, %s754_s21 }
  0x46   : > { %v327_v47 = vsel %vm325_vm2, 0.9, %v872_v46  ;;  %v328_v48 = vsel %vm326_vm3, 0.9, %v872_v46  ;;  %p757_p3 = pneg %p756_p0 }
  0x47   : > { %v273_v11 = vrot.slane %v272_v9, 1  ;;  %v279_v12 = vmax.f32 %v277_v8, %v278_v10  ;;  %v331_v51 = vcombine.low %v327_v47, %v328_v48  ;;  %p763_p12 = por %p762_p5, %p761_p13 }
  0x49   : > { %v274_v13 = vmax.f32 %v272_v9, %v273_v11  ;;  %v280_v14 = vrot.slane %v279_v12, 1  ;;  %p764_p6 = pnand %p763_p12, %p757_p3 }
  0x4b   : > { %v281_v15 = vmax.f32 %v279_v12, %v280_v14 }
  0x4d   : > { %v284_v16 = vcombine.low %v274_v13, %v281_v15  ;;  %v875_v13 = vmov 0.0  }
  0x4e   : > { %v604_v14 = vsel %vm353_vm5, 1.0, %v875_v13 }
  0x4f   : > { %v286_v17 = vsub.f32 %v260_v0, %v284_v16  ;;  %v873_v0 = vmov 1966171168   ;;  %v405_v16 = vrot.slane %v604_v14, %v319_v38 }
  0x50   : > { %v358_v1 = vunpack.c.l.s4 %v873_v0 }
  0x51   : > { %v287_v18 = vmul.f32 1.442695, %v286_v17 }
  0x52   : > { %v359_v6 = vunpack.c.0.s8 %v358_v1 }
  0x53   : > { %692 = vpow2.f32 %v287_v18 }
  0x54   : > { %v362_v10 = vsub.s32 %v359_v6, %v316_v37 }
  0x60   : > { %v693_v19 = vpop.eup %692 }
  0x61   : > { %v290_v20 = vcombine.high %v693_v19, %v693_v19  ;;  %v292_v21 = vsel %vm267_vm0, %v693_v19, 0.0 }
  0x62   : > { %v293_v22 = vrot.slane %v292_v21, 4 }
  0x63   : > { %v299_v23 = vsel %vm267_vm0, %v290_v20, 0.0 }
  0x64   : > { %v294_v24 = vadd.f32 %v293_v22, %v292_v21  ;;  %v300_v25 = vrot.slane %v299_v23, 4 }
  0x66   : > { %v295_v26 = vrot.slane %v294_v24, 2  ;;  %v301_v27 = vadd.f32 %v300_v25, %v299_v23  ;;  %v412_v23 = vsel %vm384_vm6, %v405_v16, 0.0 }
  0x68   : > { %v296_v28 = vadd.f32 %v295_v26, %v294_v24  ;;  %v302_v29 = vrot.slane %v301_v27, 2 }
  0x6a   : > { %v297_v30 = vrot.slane %v296_v28, 1  ;;  %v303_v31 = vadd.f32 %v302_v29, %v301_v27 }
  0x6c   : > { %v298_v33 = vadd.f32 %v297_v30, %v296_v28  ;;  %v304_v34 = vrot.slane %v303_v31, 1 }
  0x6e   : > { %v305_v36 = vadd.f32 %v304_v34, %v303_v31  ;;  %694 = vlog2.f32 %v298_v33 }
  0x70   : > { %696 = vlog2.f32 %v305_v36 }
  0x7b   : > { %v695_v43 = vpop.eup %694 }
  0x7c   : > { %v307_v44 = vmul.f32 0.6931472, %v695_v43 }
  0x7d   : > { %v697_v45 = vpop.eup %696 }
  0x7e   : > { %v309_v49 = vmul.f32 0.6931472, %v697_v45 }
  0x80   : > { %v312_v50 = vcombine.low %v307_v44, %v309_v49 }
  0x82   : > { %v314_v52 = vsub.f32 %v286_v17, %v312_v50  ;;  %v409_v17 = vrot.slane %v604_v14, %v323_v39 }
  0x84   : > { %v333_v53 = vmul.f32 %v331_v51, %v314_v52  ;;  %v413_v24 = vsel %vm384_vm6, %v409_v17, 0.0 }
  0x85   : > { %v414_v26 = vadd.f32 %v413_v24, %v412_v23 }
  0x86   : > { %v335_v54 = vcombine.high %v333_v53, %v333_v53  ;;  %v337_v55 = vsel %vm267_vm0, %v333_v53, 0.0 }
  0x87   : > { %v338_v56 = vrot.slane %v337_v55, 4 }
  0x88   : > { %v344_v57 = vsel %vm267_vm0, %v335_v54, 0.0 }
  0x89   : > { %v339_v58 = vadd.f32 %v338_v56, %v337_v55  ;;  %v345_v59 = vrot.slane %v344_v57, 4 }
  0x8b   : > { %v340_v60 = vrot.slane %v339_v58, 2  ;;  %v346_v61 = vadd.f32 %v345_v59, %v344_v57 }
  0x8d   : > { %v341_v62 = vadd.f32 %v340_v60, %v339_v58  ;;  %v347_v63 = vrot.slane %v346_v61, 2 }
  0x8f   : > { %v342_v2 = vrot.slane %v341_v62, 1  ;;  %v348_v3 = vadd.f32 %v347_v63, %v346_v61 }
  0x91   : > { %v343_v4 = vadd.f32 %v342_v2, %v341_v62  ;;  %v349_v5 = vrot.slane %v348_v3, 1 }
  0x93   : > { %v350_v7 = vadd.f32 %v349_v5, %v348_v3  ;;  %v351_v8 = vsub.f32 0.0, %v343_v4 }
  0x95   : > { %v352_v9 = vsub.f32 0.0, %v350_v7 }
  0x97   : > { %v356_v11 = vcombine.low %v351_v8, %v352_v9 }
  0x99   : > { %v363_v12 = vrot.slane %v356_v11, %v362_v10 }
  0x9b   : > { %v370_v15 = vrot.slane %v363_v12, %v362_v10 }
  0x9d   : > { %v372_v18 = vsel %vm353_vm5, %v370_v15, 0.0 }
  0x9e   : > { %v377_v19 = vrot.slane %v372_v18, %v319_v38  ;;  %v381_v20 = vrot.slane %v372_v18, %v323_v39 }
  0xa0   : > { %v385_v21 = vsel %vm384_vm6, %v377_v19, 0.0  ;;  %v386_v22 = vsel %vm384_vm6, %v381_v20, 0.0 }
  0xa1   : > { %v387_v25 = vadd.f32 %v386_v22, %v385_v21 }
  0xa3   : > { %388 = vadd.xlane.f32.xlu0 %v387_v25 }
  0xa7   : > { %415 = vadd.xlane.f32.xlu0 %v414_v26 }
 0x12c   : > { %v389_v27 = vpop.xlane.xlu0 %388 }
 0x12d   : > { %v390_v28 = vrot.slane %v389_v27, 4 }
 0x12f   : > { %v391_v29 = vadd.f32 %v390_v28, %v389_v27 }
 0x130   : > { %v416_v30 = vpop.xlane.xlu0 %415 }
 0x131   : > { %v392_v31 = vrot.slane %v391_v29, 2  ;;  %v417_v32 = vrot.slane %v416_v30, 4 }
 0x133   : > { %v418_v33 = vadd.f32 %v417_v32, %v416_v30  ;;  %v393_v34 = vadd.f32 %v392_v31, %v391_v29 }
 0x135   : > { %v419_v35 = vrot.slane %v418_v33, 2  ;;  %v394_v36 = vrot.slane %v393_v34, 1 }
 0x137   : > { %v420_v37 = vadd.f32 %v419_v35, %v418_v33  ;;  %v395_v38 = vadd.f32 %v394_v36, %v393_v34 }
 0x139   : > { %611 = vpush %v395_v38  ;;  %v421_v39 = vrot.slane %v420_v37, 1 }
 0x13b   : > { %v422_v40 = vadd.f32 %v421_v39, %v420_v37 }
 0x13d   : > { %613 = vpush %v422_v40 }
 0x16a   : > { %s612_s8 = spop %611 }
 0x16b   : > { %v397_v41 = vstv %s612_s8 }
 0x16c   : > { %398 = vst [vmem:[%s251_s4] sm:$0x1] %v397_v41 }
 0x16d   : > { %767 = shalt.err (!%p764_p6)
}
 0x16e   : > { %s768_s22 = scalar_lea.hbm %s1043_s6, 16  ;;  %s772_s18 = scalar_lea.hbm %s1119_s2, 32 }
 0x16f   : > { %p769_p7 = scmp.ne.s32.totalorder %s1043_s6, %s768_s22  ;;  %p773_p4 = scmp.lt.s32.totalorder %s1043_s6, %s1119_s2 }
 0x170   : > { %p774_p10 = scmp.lt.s32.totalorder %s772_s18, %s768_s22 }
 0x171   : > { %p770_p1 = pnand %p769_p7, %p949_p9 }
 0x172   : > { %p775_p8 = por %p774_p10, %p773_p4 }
 0x173   : > { %p771_p2 = pneg %p770_p1 }
 0x175   : > { %p776_p0 = pnand %p775_p8, %p771_p2 }
 0x177   : > { %779 = shalt.err (!%p776_p0)
}
 0x178   : > { %619 = dma.vmem_to_hbm [thread:$0]  (%p949_p9), %s1045_s5, 16, %s1043_s6, %s427_s10  }
 0x179   : > { %s614_s21 = spop %613  ;;  %s456_s9 = scalar_lea.hbm %s1120_s3, %s605_s24 }
 0x17a   : > { %v424_v42 = vstv %s614_s21  ;;  %s431_s22 = scalar_lea.sflag [#allocation9], %s1008_s28  ;;  %s780_s30 = scalar_lea.vmem %s1047_s11, 16 }
 0x17b   : > { %425 = vst [vmem:[%s257_s7] sm:$0x1] %v424_v42  ;;  %p781_p3 = scmp.ne.s32.totalorder %s1047_s11, %s780_s30  ;;  %s877_s4 = smov [#allocation8]  }
 0x17c   : > { %s784_s18 = sshll.u32 %s877_s4, 4  ;;  %s785_s18 = int_to_ptr.vmem [resolvable:$false] %s784_s18 }
 0x17d   : > { %p782_p13 = pnand %p781_p3, %p949_p9  ;;  %s786_s19 = scalar_lea.vmem %s785_s18, 32 }
 0x17e   : > { %p787_p12 = scmp.lt.s32.totalorder %s1047_s11, %s785_s18  ;;  %p788_p6 = scmp.lt.s32.totalorder %s786_s19, %s780_s30 }
 0x17f   : > { %p783_p5 = pneg %p782_p13 }
 0x180   : > { %p789_p7 = por %p788_p6, %p787_p12 }
 0x182   : > { %p790_p1 = pnand %p789_p7, %p783_p5 }
 0x184   : > { %793 = shalt.err (!%p790_p1)
}
 0x185   : > { %s794_s15 = scalar_lea.hbm %s456_s9, 16  ;;  %s798_s5 = scalar_lea.hbm %s1120_s3, 32 }
 0x186   : > { %p795_p2 = scmp.ne.s32.totalorder %s456_s9, %s794_s15  ;;  %p799_p8 = scmp.lt.s32.totalorder %s456_s9, %s1120_s3 }
 0x187   : > { %p800_p0 = scmp.lt.s32.totalorder %s798_s5, %s794_s15 }
 0x188   : > { %p796_p4 = pnand %p795_p2, %p949_p9 }
 0x189   : > { %p801_p3 = por %p800_p0, %p799_p8 }
 0x18a   : > { %p797_p10 = pneg %p796_p4 }
 0x18c   : > { %p802_p13 = pnand %p801_p3, %p797_p10 }
 0x18e   : > { %805 = shalt.err (!%p802_p13)
}
 0x18f   : > { %620 = dma.vmem_to_hbm [thread:$0]  (%p949_p9), %s1047_s11, 16, %s456_s9, %s431_s22  }
 0x190 PF: > { %s470_s10 = sand.u32 1, %s848_s12   ;;  %p1127_p5 = scmp.ge.s32.totalorder %s868_s17, 2 }
 0x191   : > { %s471_s8 = scalar_lea.sflag [#allocation4], %s470_s10 }
 0x192   : > { %p631_p12 = pnand %p1127_p5, %p956_p11 }
 0x194   : > { %p632_p6 = pneg %p631_p12 }
 0x196   : > { %839 = dma.done.wait (%p632_p6), %s471_s8, 16  }
 0x197   : > { %841 = vsyncadd (%p632_p6), %s471_s8, 4294967280  ;;  %s479_s21 = scalar_lea.sflag [#allocation9], %s470_s10 }
 0x198   : > { %843 = dma.done.wait (%p632_p6), %s479_s21, 16  }
 0x199   : > { %845 = vsyncadd (%p632_p6), %s479_s21, 4294967280  ;;  %s26_s17 = sadd.s32 1, %s868_s17   ;;  %s1128_s12 = smov %s852_s13 }
 0x19a   : > { %p23_p7 = scmp.ge.s32.totalorder %s26_s17, 4   ;;  %s1129_s13 = smov %s856_s14 }
 0x19b   : > { %s1130_s14 = smov %s954_s26  ;;  %s1131_s15 = smov %s864_s16 }
 0x19c   : > { %s1132_s16 = smov %s1134_s20  ;;  %25 = sbr.rel (!%p23_p7) target bundleno = 10 (0xa), region = 103 }
 0x1a1   :  { %483 = vsyncpa [#allocation3], 1 }
 0x1a2   :  { %485 = vsyncpa [#allocation3 + $0x1], 1 }
 0x1a3   :  { %486 = vsyncpa [#allocation6], 1 }
 0x1a4   :  { %488 = vsyncpa [#allocation6 + $0x1], 1 }
 0x1a5   :  { %489 = vsyncpa [#allocation4], 1 }
 0x1a6   :  { %491 = vsyncpa [#allocation4 + $0x1], 1 }
 0x1a7   :  { %492 = vsyncpa [#allocation9], 1 }
 0x1a8   :  { %494 = vsyncpa [#allocation9 + $0x1], 1 }

</bundles_post_ra>
